<compile_context>
chip_gen: v5e
topology: v5e:2x2
jax: 0.10.0
libtpu: 0.0.40
codegen_flags: <defaults>
</compile_context>

<pallas_src>
import jax
import jax.numpy as jnp
from jax import lax
from jax.experimental import pallas as pl
from jax.experimental.pallas import tpu as pltpu

KH = KW = 2      # conv kernel size
DIL = 2          # dilation
PAD = 4          # padding
C_OUT = 8        # output channels
EPS = 1e-5       # BatchNorm eps
MIN_V = 0.1      # clamp_min
MAX_V = 0.11     # clamp_max
LANE = 128
MAX_TILE = 2048  # lanes per M tile (multiple of 128), acc stays in ~16 vregs


def _round_up(a, b):
    return (a + b - 1) // b * b


def _conv_tile(taps, w):
    """taps: (KH*KW, T), w: (C_OUT, KH*KW) -> (C_OUT, T) conv acc (no bias)."""
    acc = w[:, 0:1] * taps[0:1, :]
    for t in range(1, KH * KW):
        acc = acc + w[:, t:t + 1] * taps[t:t + 1, :]
    return acc


def stats_kernel(taps_ref, w_ref, sum_ref, ssq_ref):
    # taps_ref: (1, KH*KW, T)   f32 VMEM  -- im2col taps, zero tail
    # w_ref   : (C_OUT, KH*KW)  f32 VMEM  -- conv weights (in_ch==1 squeezed)
    # sum_ref : (1, C_OUT, 128) f32 VMEM  -- per-sample resident accumulator
    # ssq_ref : (1, C_OUT, 128) f32 VMEM  -- per-sample resident accumulator
    @pl.when(pl.program_id(1) == 0)
    def _init():
        sum_ref[...] = jnp.zeros_like(sum_ref)
        ssq_ref[...] = jnp.zeros_like(ssq_ref)

    acc = _conv_tile(taps_ref[0], w_ref[...])             # (C_OUT, T)
    s = jnp.sum(acc, axis=-1, keepdims=True)              # (C_OUT, 1)
    ss = jnp.sum(acc * acc, axis=-1, keepdims=True)       # (C_OUT, 1)
    # Lane-broadcast accumulate (full unmasked (8,128) stores); every lane
    # ends up holding the running total -> wrapper reads lane 0.
    sum_ref[0] += s
    ssq_ref[0] += ss


def apply_kernel(taps_ref, w_ref, scale_ref, shift_ref, o_ref):
    # Recompute the cheap 4-tap conv, apply fused BN affine, clamp, store.
    acc = _conv_tile(taps_ref[0], w_ref[...])             # (C_OUT, T)
    y = acc * scale_ref[...] + shift_ref[...]             # per-channel affine
    o_ref[0] = jnp.minimum(jnp.maximum(y, MIN_V), MAX_V)  # lane-dense store


@jax.jit
def model_forward(x, w, b, gamma, beta):
    """x: (N, 1, H, W) float32 NCHW. Returns (N, 8, Ho, Wo) float32 NCHW."""
    n, cin, h, wd = x.shape
    assert cin == 1
    hp, wp = h + 2 * PAD, wd + 2 * PAD
    ho = hp - DIL * (KH - 1)          # stride == 1
    wo = wp - DIL * (KW - 1)
    s = ho * wo                       # per-sample output pixels
    tile = min(MAX_TILE, _round_up(s, LANE))
    s_pad = _round_up(s, tile)
    n_s = s_pad // tile
    m = n * s                         # true BN element count per channel

    # Wrapper-side pad + im2col -> lane-dense (N, 4, S_pad) tap slab.
    xp = jnp.pad(x[:, 0].astype(jnp.float32),
                 ((0, 0), (PAD, PAD), (PAD, PAD)))
    taps = jnp.stack(
        [xp[:, DIL * ky:DIL * ky + ho, DIL * kx:DIL * kx + wo].reshape(n, -1)
         for ky in range(KH) for kx in range(KW)], axis=1)      # (N, 4, S)
    taps = jnp.pad(taps, ((0, 0), (0, 0), (0, s_pad - s)))      # zero tail

    w2 = w.reshape(C_OUT, KH * KW).astype(jnp.float32)

    taps_spec = pl.BlockSpec((1, KH * KW, tile), lambda i, j: (i, 0, j))
    w_spec = pl.BlockSpec((C_OUT, KH * KW), lambda i, j: (0, 0))
    stat_spec = pl.BlockSpec((1, C_OUT, LANE), lambda i, j: (i, 0, 0))

    # ---- phase 0: per-channel batch statistics (sum, sum of squares) -------
    sum_out, ssq_out = pl.pallas_call(
        stats_kernel,
        out_shape=(jax.ShapeDtypeStruct((n, C_OUT, LANE), jnp.float32),
                   jax.ShapeDtypeStruct((n, C_OUT, LANE), jnp.float32)),
        grid_spec=pltpu.PrefetchScalarGridSpec(
            num_scalar_prefetch=0,
            grid=(n, n_s),
            in_specs=[taps_spec, w_spec],
            out_specs=[stat_spec, stat_spec]),
        compiler_params=pltpu.CompilerParams(
            dimension_semantics=("parallel", "arbitrary")),
    )(taps, w2)

    sum_c = jnp.sum(sum_out[:, :, 0], axis=0)        # (C_OUT,)
    ssq_c = jnp.sum(ssq_out[:, :, 0], axis=0)        # (C_OUT,)
    inv_m = 1.0 / float(m)
    mean_acc = sum_c * inv_m                          # mean of conv (no bias)
    var = jnp.maximum(ssq_c * inv_m - mean_acc * mean_acc, 0.0)
    scale = gamma.astype(jnp.float32) * lax.rsqrt(var + EPS)
    # Conv bias shifts both v1 and its batch mean -> cancels in BN output:
    # y = (acc - mean_acc) * scale + beta  ==  acc * scale + shift
    shift = beta.astype(jnp.float32) - mean_acc * scale
    _ = b  # intentionally unused: bias has no effect under training-mode BN

    # ---- phase 1: apply BN affine + clamp, N-major lane-dense output -------
    out_slab = pl.pallas_call(
        apply_kernel,
        out_shape=jax.ShapeDtypeStruct((n, C_OUT, s_pad), jnp.float32),
        grid_spec=pltpu.PrefetchScalarGridSpec(
            num_scalar_prefetch=0,
            grid=(n, n_s),
            in_specs=[taps_spec, w_spec,
                      pl.BlockSpec((C_OUT, 1), lambda i, j: (0, 0)),
                      pl.BlockSpec((C_OUT, 1), lambda i, j: (0, 0))],
            out_specs=pl.BlockSpec((1, C_OUT, tile), lambda i, j: (i, 0, j))),
        compiler_params=pltpu.CompilerParams(
            dimension_semantics=("parallel", "parallel")),
    )(taps, w2, scale.reshape(C_OUT, 1), shift.reshape(C_OUT, 1))

    # Slice off the lane padding; already N-major -> no transpose needed.
    return out_slab[:, :, :s].reshape(n, C_OUT, ho, wo)


def reference_forward(x, w, b, gamma, beta):
    """Pure-JAX reference of the PyTorch module (training-mode BatchNorm)."""
    v1 = lax.conv_general_dilated(
        x.astype(jnp.float32), w.astype(jnp.float32),
        window_strides=(1, 1),
        padding=((PAD, PAD), (PAD, PAD)),
        rhs_dilation=(DIL, DIL),
        dimension_numbers=("NCHW", "OIHW", "NCHW"),
    ) + b.reshape(1, C_OUT, 1, 1)
    mean = jnp.mean(v1, axis=(0, 2, 3), keepdims=True)
    var = jnp.mean((v1 - mean) ** 2, axis=(0, 2, 3), keepdims=True)
    v2 = (v1 - mean) * lax.rsqrt(var + EPS) * gamma.reshape(1, C_OUT, 1, 1) \
         + beta.reshape(1, C_OUT, 1, 1)
    return jnp.minimum(jnp.maximum(v2, MIN_V), MAX_V)


if __name__ == "__main__":
    key = jax.random.PRNGKey(0)
    k_x, k_w, k_b = jax.random.split(key, 3)

    # Small, module-consistent shapes: batch=2, in_ch=1, spatial=16
    N, H, W = 2, 16, 16
    x = jax.random.normal(k_x, (N, 1, H, W), dtype=jnp.float32)

    # Deterministic parameter init (PyTorch-like uniform(-1/sqrt(fan_in), ...))
    bound = 1.0 / (1 * KH * KW) ** 0.5
    w = jax.random.uniform(k_w, (C_OUT, 1, KH, KW),
                           minval=-bound, maxval=bound, dtype=jnp.float32)
    b = jax.random.uniform(k_b, (C_OUT,),
                           minval=-bound, maxval=bound, dtype=jnp.float32)
    gamma = jnp.ones((C_OUT,), jnp.float32)   # BatchNorm default weight
    beta = jnp.zeros((C_OUT,), jnp.float32)   # BatchNorm default bias

    out = jax.block_until_ready(model_forward(x, w, b, gamma, beta))
    ref = jax.block_until_ready(reference_forward(x, w, b, gamma, beta))

    ho = H + 2 * PAD - DIL * (KH - 1)
    wo = W + 2 * PAD - DIL * (KW - 1)
    assert out.shape == (N, C_OUT, ho, wo), out.shape
    err = float(jnp.max(jnp.abs(out - ref)))
    assert err < 2e-5, f"max abs err {err}"

    print("KERNEL_OK")
</pallas_src>

<mosaic_0001>
module attributes {stable_mosaic.version = 11 : i64} {
  func.func @stats_kernel(%arg0: i32, %arg1: i32, %arg2: memref<1x4x512xf32, #tpu.memory_space<vmem>>, %arg3: memref<8x4xf32, #tpu.memory_space<vmem>>, %arg4: memref<1x8x128xf32, #tpu.memory_space<vmem>>, %arg5: memref<1x8x128xf32, #tpu.memory_space<vmem>>) attributes {dimension_semantics = [#tpu.dimension_semantics<parallel>, #tpu.dimension_semantics<arbitrary>], iteration_bounds = array<i64: 2, 1>, scalar_prefetch = 0 : i64, scratch_operands = 0 : i64, tpu.core_type = #tpu.core_type<tc>, window_params = [{transform_indices = @transform_0, window_bounds = array<i64: 1, 4, 512>}, {pipeline_mode = #tpu.pipeline_mode<synchronous>, transform_indices = @transform_1, window_bounds = array<i64: 8, 4>}, {transform_indices = @transform_2, window_bounds = array<i64: 1, 8, 128>}, {transform_indices = @transform_3, window_bounds = array<i64: 1, 8, 128>}]} {
    %c0_i32 = arith.constant 0 : i32
    %0 = arith.cmpi eq, %arg1, %c0_i32 : i32
    %1 = arith.extui %0 : i1 to i32
    %c0_i32_0 = arith.constant 0 : i32
    %2 = arith.cmpi ne, %1, %c0_i32_0 : i32
    scf.if %2 {
      %cst_18 = arith.constant 0.000000e+00 : f32
      %48 = vector.broadcast %cst_18 : f32 to vector<1x8x128xf32>
      %c0_19 = arith.constant 0 : index
      %c0_20 = arith.constant 0 : index
      %c0_21 = arith.constant 0 : index
      %49 = vector.load %arg4[%c0_19, %c0_20, %c0_21] : memref<1x8x128xf32, #tpu.memory_space<vmem>>, vector<1x8x128xf32>
      tpu.vector_store %arg4[%c0_19, %c0_20, %c0_21], %48 {strides = array<i32>} : memref<1x8x128xf32, #tpu.memory_space<vmem>>, vector<1x8x128xf32>,
      %cst_22 = arith.constant 0.000000e+00 : f32
      %50 = vector.broadcast %cst_22 : f32 to vector<1x8x128xf32>
      %c0_23 = arith.constant 0 : index
      %c0_24 = arith.constant 0 : index
      %c0_25 = arith.constant 0 : index
      %51 = vector.load %arg5[%c0_23, %c0_24, %c0_25] : memref<1x8x128xf32, #tpu.memory_space<vmem>>, vector<1x8x128xf32>
      tpu.vector_store %arg5[%c0_23, %c0_24, %c0_25], %50 {strides = array<i32>} : memref<1x8x128xf32, #tpu.memory_space<vmem>>, vector<1x8x128xf32>,
    } else {
    }
    %c0 = arith.constant 0 : index
    %c0_1 = arith.constant 0 : index
    %c0_2 = arith.constant 0 : index
    %3 = vector.load %arg2[%c0, %c0_1, %c0_2] : memref<1x4x512xf32, #tpu.memory_space<vmem>>, vector<1x4x512xf32>
    %4 = vector.shape_cast %3 : vector<1x4x512xf32> to vector<4x512xf32>
    %c0_3 = arith.constant 0 : index
    %c0_4 = arith.constant 0 : index
    %5 = vector.load %arg3[%c0_3, %c0_4] : memref<8x4xf32, #tpu.memory_space<vmem>>, vector<8x4xf32>
    %6 = vector.extract_strided_slice %5 {offsets = [0, 0], sizes = [8, 1], strides = [1, 1]} : vector<8x4xf32> to vector<8x1xf32>
    %7 = vector.extract_strided_slice %4 {offsets = [0, 0], sizes = [1, 512], strides = [1, 1]} : vector<4x512xf32> to vector<1x512xf32>
    %8 = vector.broadcast %6 : vector<8x1xf32> to vector<8x512xf32>
    %9 = vector.broadcast %7 : vector<1x512xf32> to vector<8x512xf32>
    %10 = arith.mulf %8, %9 : vector<8x512xf32>
    %11 = vector.extract_strided_slice %5 {offsets = [0, 1], sizes = [8, 1], strides = [1, 1]} : vector<8x4xf32> to vector<8x1xf32>
    %12 = vector.extract_strided_slice %4 {offsets = [1, 0], sizes = [1, 512], strides = [1, 1]} : vector<4x512xf32> to vector<1x512xf32>
    %13 = vector.broadcast %11 : vector<8x1xf32> to vector<8x512xf32>
    %14 = vector.broadcast %12 : vector<1x512xf32> to vector<8x512xf32>
    %15 = arith.mulf %13, %14 : vector<8x512xf32>
    %16 = arith.addf %10, %15 : vector<8x512xf32>
    %17 = vector.extract_strided_slice %5 {offsets = [0, 2], sizes = [8, 1], strides = [1, 1]} : vector<8x4xf32> to vector<8x1xf32>
    %18 = vector.extract_strided_slice %4 {offsets = [2, 0], sizes = [1, 512], strides = [1, 1]} : vector<4x512xf32> to vector<1x512xf32>
    %19 = vector.broadcast %17 : vector<8x1xf32> to vector<8x512xf32>
    %20 = vector.broadcast %18 : vector<1x512xf32> to vector<8x512xf32>
    %21 = arith.mulf %19, %20 : vector<8x512xf32>
    %22 = arith.addf %16, %21 : vector<8x512xf32>
    %23 = vector.extract_strided_slice %5 {offsets = [0, 3], sizes = [8, 1], strides = [1, 1]} : vector<8x4xf32> to vector<8x1xf32>
    %24 = vector.extract_strided_slice %4 {offsets = [3, 0], sizes = [1, 512], strides = [1, 1]} : vector<4x512xf32> to vector<1x512xf32>
    %25 = vector.broadcast %23 : vector<8x1xf32> to vector<8x512xf32>
    %26 = vector.broadcast %24 : vector<1x512xf32> to vector<8x512xf32>
    %27 = arith.mulf %25, %26 : vector<8x512xf32>
    %28 = arith.addf %22, %27 : vector<8x512xf32>
    %cst = arith.constant dense<0.000000e+00> : vector<8xf32>
    %29 = vector.multi_reduction <add>, %28, %cst [1] : vector<8x512xf32> to vector<8xf32>
    %30 = vector.shape_cast %29 : vector<8xf32> to vector<8x1xf32>
    %31 = arith.mulf %28, %28 : vector<8x512xf32>
    %cst_5 = arith.constant dense<0.000000e+00> : vector<8xf32>
    %32 = vector.multi_reduction <add>, %31, %cst_5 [1] : vector<8x512xf32> to vector<8xf32>
    %33 = vector.shape_cast %32 : vector<8xf32> to vector<8x1xf32>
    %c0_6 = arith.constant 0 : index
    %c0_7 = arith.constant 0 : index
    %c0_8 = arith.constant 0 : index
    %34 = vector.load %arg4[%c0_6, %c0_7, %c0_8] : memref<1x8x128xf32, #tpu.memory_space<vmem>>, vector<1x8x128xf32>
    %35 = vector.shape_cast %34 : vector<1x8x128xf32> to vector<8x128xf32>
    %36 = vector.broadcast %30 : vector<8x1xf32> to vector<8x128xf32>
    %37 = arith.addf %35, %36 : vector<8x128xf32>
    %c0_9 = arith.constant 0 : index
    %c0_10 = arith.constant 0 : index
    %c0_11 = arith.constant 0 : index
    %38 = vector.load %arg4[%c0_9, %c0_10, %c0_11] : memref<1x8x128xf32, #tpu.memory_space<vmem>>, vector<1x8x128xf32>
    %39 = vector.shape_cast %38 : vector<1x8x128xf32> to vector<8x128xf32>
    %40 = vector.shape_cast %37 : vector<8x128xf32> to vector<1x8x128xf32>
    tpu.vector_store %arg4[%c0_9, %c0_10, %c0_11], %40 {strides = array<i32>} : memref<1x8x128xf32, #tpu.memory_space<vmem>>, vector<1x8x128xf32>,
    %c0_12 = arith.constant 0 : index
    %c0_13 = arith.constant 0 : index
    %c0_14 = arith.constant 0 : index
    %41 = vector.load %arg5[%c0_12, %c0_13, %c0_14] : memref<1x8x128xf32, #tpu.memory_space<vmem>>, vector<1x8x128xf32>
    %42 = vector.shape_cast %41 : vector<1x8x128xf32> to vector<8x128xf32>
    %43 = vector.broadcast %33 : vector<8x1xf32> to vector<8x128xf32>
    %44 = arith.addf %42, %43 : vector<8x128xf32>
    %c0_15 = arith.constant 0 : index
    %c0_16 = arith.constant 0 : index
    %c0_17 = arith.constant 0 : index
    %45 = vector.load %arg5[%c0_15, %c0_16, %c0_17] : memref<1x8x128xf32, #tpu.memory_space<vmem>>, vector<1x8x128xf32>
    %46 = vector.shape_cast %45 : vector<1x8x128xf32> to vector<8x128xf32>
    %47 = vector.shape_cast %44 : vector<8x128xf32> to vector<1x8x128xf32>
    tpu.vector_store %arg5[%c0_15, %c0_16, %c0_17], %47 {strides = array<i32>} : memref<1x8x128xf32, #tpu.memory_space<vmem>>, vector<1x8x128xf32>,
    return
  }
  func.func @transform_0(%arg0: i32, %arg1: i32) -> (i32, i32, i32) {
    %c0_i32 = arith.constant 0 : i32
    %c0_i32_0 = arith.constant 0 : i32
    return %arg0, %c0_i32, %arg1 : i32, i32, i32
  }
  func.func @transform_1(%arg0: i32, %arg1: i32) -> (i32, i32) {
    %c0_i32 = arith.constant 0 : i32
    %c0_i32_0 = arith.constant 0 : i32
    %c0_i32_1 = arith.constant 0 : i32
    return %c0_i32, %c0_i32_0 : i32, i32
  }
  func.func @transform_2(%arg0: i32, %arg1: i32) -> (i32, i32, i32) {
    %c0_i32 = arith.constant 0 : i32
    %c0_i32_0 = arith.constant 0 : i32
    %c0_i32_1 = arith.constant 0 : i32
    return %arg0, %c0_i32, %c0_i32_0 : i32, i32, i32
  }
  func.func @transform_3(%arg0: i32, %arg1: i32) -> (i32, i32, i32) {
    %c0_i32 = arith.constant 0 : i32
    %c0_i32_0 = arith.constant 0 : i32
    %c0_i32_1 = arith.constant 0 : i32
    return %arg0, %c0_i32, %c0_i32_0 : i32, i32, i32
  }
}

module attributes {stable_mosaic.version = 11 : i64} {
  func.func @apply_kernel(%arg0: i32, %arg1: i32, %arg2: memref<1x4x512xf32, #tpu.memory_space<vmem>>, %arg3: memref<8x4xf32, #tpu.memory_space<vmem>>, %arg4: memref<8x1xf32, #tpu.memory_space<vmem>>, %arg5: memref<8x1xf32, #tpu.memory_space<vmem>>, %arg6: memref<1x8x512xf32, #tpu.memory_space<vmem>>) attributes {dimension_semantics = [#tpu.dimension_semantics<parallel>, #tpu.dimension_semantics<parallel>], iteration_bounds = array<i64: 2, 1>, scalar_prefetch = 0 : i64, scratch_operands = 0 : i64, tpu.core_type = #tpu.core_type<tc>, window_params = [{transform_indices = @transform_0, window_bounds = array<i64: 1, 4, 512>}, {pipeline_mode = #tpu.pipeline_mode<synchronous>, transform_indices = @transform_1, window_bounds = array<i64: 8, 4>}, {pipeline_mode = #tpu.pipeline_mode<synchronous>, transform_indices = @transform_2, window_bounds = array<i64: 8, 1>}, {pipeline_mode = #tpu.pipeline_mode<synchronous>, transform_indices = @transform_3, window_bounds = array<i64: 8, 1>}, {transform_indices = @transform_4, window_bounds = array<i64: 1, 8, 512>}]} {
    %c0 = arith.constant 0 : index
    %c0_0 = arith.constant 0 : index
    %c0_1 = arith.constant 0 : index
    %0 = vector.load %arg2[%c0, %c0_0, %c0_1] : memref<1x4x512xf32, #tpu.memory_space<vmem>>, vector<1x4x512xf32>
    %1 = vector.shape_cast %0 : vector<1x4x512xf32> to vector<4x512xf32>
    %c0_2 = arith.constant 0 : index
    %c0_3 = arith.constant 0 : index
    %2 = vector.load %arg3[%c0_2, %c0_3] : memref<8x4xf32, #tpu.memory_space<vmem>>, vector<8x4xf32>
    %3 = vector.extract_strided_slice %2 {offsets = [0, 0], sizes = [8, 1], strides = [1, 1]} : vector<8x4xf32> to vector<8x1xf32>
    %4 = vector.extract_strided_slice %1 {offsets = [0, 0], sizes = [1, 512], strides = [1, 1]} : vector<4x512xf32> to vector<1x512xf32>
    %5 = vector.broadcast %3 : vector<8x1xf32> to vector<8x512xf32>
    %6 = vector.broadcast %4 : vector<1x512xf32> to vector<8x512xf32>
    %7 = arith.mulf %5, %6 : vector<8x512xf32>
    %8 = vector.extract_strided_slice %2 {offsets = [0, 1], sizes = [8, 1], strides = [1, 1]} : vector<8x4xf32> to vector<8x1xf32>
    %9 = vector.extract_strided_slice %1 {offsets = [1, 0], sizes = [1, 512], strides = [1, 1]} : vector<4x512xf32> to vector<1x512xf32>
    %10 = vector.broadcast %8 : vector<8x1xf32> to vector<8x512xf32>
    %11 = vector.broadcast %9 : vector<1x512xf32> to vector<8x512xf32>
    %12 = arith.mulf %10, %11 : vector<8x512xf32>
    %13 = arith.addf %7, %12 : vector<8x512xf32>
    %14 = vector.extract_strided_slice %2 {offsets = [0, 2], sizes = [8, 1], strides = [1, 1]} : vector<8x4xf32> to vector<8x1xf32>
    %15 = vector.extract_strided_slice %1 {offsets = [2, 0], sizes = [1, 512], strides = [1, 1]} : vector<4x512xf32> to vector<1x512xf32>
    %16 = vector.broadcast %14 : vector<8x1xf32> to vector<8x512xf32>
    %17 = vector.broadcast %15 : vector<1x512xf32> to vector<8x512xf32>
    %18 = arith.mulf %16, %17 : vector<8x512xf32>
    %19 = arith.addf %13, %18 : vector<8x512xf32>
    %20 = vector.extract_strided_slice %2 {offsets = [0, 3], sizes = [8, 1], strides = [1, 1]} : vector<8x4xf32> to vector<8x1xf32>
    %21 = vector.extract_strided_slice %1 {offsets = [3, 0], sizes = [1, 512], strides = [1, 1]} : vector<4x512xf32> to vector<1x512xf32>
    %22 = vector.broadcast %20 : vector<8x1xf32> to vector<8x512xf32>
    %23 = vector.broadcast %21 : vector<1x512xf32> to vector<8x512xf32>
    %24 = arith.mulf %22, %23 : vector<8x512xf32>
    %25 = arith.addf %19, %24 : vector<8x512xf32>
    %c0_4 = arith.constant 0 : index
    %c0_5 = arith.constant 0 : index
    %26 = vector.load %arg4[%c0_4, %c0_5] : memref<8x1xf32, #tpu.memory_space<vmem>>, vector<8x1xf32>
    %27 = vector.broadcast %26 : vector<8x1xf32> to vector<8x512xf32>
    %28 = arith.mulf %25, %27 : vector<8x512xf32>
    %c0_6 = arith.constant 0 : index
    %c0_7 = arith.constant 0 : index
    %29 = vector.load %arg5[%c0_6, %c0_7] : memref<8x1xf32, #tpu.memory_space<vmem>>, vector<8x1xf32>
    %30 = vector.broadcast %29 : vector<8x1xf32> to vector<8x512xf32>
    %31 = arith.addf %28, %30 : vector<8x512xf32>
    %cst = arith.constant 1.000000e-01 : f32
    %32 = vector.broadcast %cst : f32 to vector<8x512xf32>
    %33 = arith.maximumf %31, %32 : vector<8x512xf32>
    %cst_8 = arith.constant 1.100000e-01 : f32
    %34 = vector.broadcast %cst_8 : f32 to vector<8x512xf32>
    %35 = arith.minimumf %33, %34 : vector<8x512xf32>
    %c0_9 = arith.constant 0 : index
    %c0_10 = arith.constant 0 : index
    %c0_11 = arith.constant 0 : index
    %36 = vector.load %arg6[%c0_9, %c0_10, %c0_11] : memref<1x8x512xf32, #tpu.memory_space<vmem>>, vector<1x8x512xf32>
    %37 = vector.shape_cast %36 : vector<1x8x512xf32> to vector<8x512xf32>
    %38 = vector.shape_cast %35 : vector<8x512xf32> to vector<1x8x512xf32>
    tpu.vector_store %arg6[%c0_9, %c0_10, %c0_11], %38 {strides = array<i32>} : memref<1x8x512xf32, #tpu.memory_space<vmem>>, vector<1x8x512xf32>,
    return
  }
  func.func @transform_0(%arg0: i32, %arg1: i32) -> (i32, i32, i32) {
    %c0_i32 = arith.constant 0 : i32
    %c0_i32_0 = arith.constant 0 : i32
    return %arg0, %c0_i32, %arg1 : i32, i32, i32
  }
  func.func @transform_1(%arg0: i32, %arg1: i32) -> (i32, i32) {
    %c0_i32 = arith.constant 0 : i32
    %c0_i32_0 = arith.constant 0 : i32
    %c0_i32_1 = arith.constant 0 : i32
    return %c0_i32, %c0_i32_0 : i32, i32
  }
  func.func @transform_2(%arg0: i32, %arg1: i32) -> (i32, i32) {
    %c0_i32 = arith.constant 0 : i32
    %c0_i32_0 = arith.constant 0 : i32
    %c0_i32_1 = arith.constant 0 : i32
    return %c0_i32, %c0_i32_0 : i32, i32
  }
  func.func @transform_3(%arg0: i32, %arg1: i32) -> (i32, i32) {
    %c0_i32 = arith.constant 0 : i32
    %c0_i32_0 = arith.constant 0 : i32
    %c0_i32_1 = arith.constant 0 : i32
    return %c0_i32, %c0_i32_0 : i32, i32
  }
  func.func @transform_4(%arg0: i32, %arg1: i32) -> (i32, i32, i32) {
    %c0_i32 = arith.constant 0 : i32
    %c0_i32_0 = arith.constant 0 : i32
    return %arg0, %c0_i32, %arg1 : i32, i32, i32
  }
}

</mosaic_0001>

<bundles_post_ra>
// kernel: model_forward.3
= control target key start
LH: loop header
LB: loop body
LE: loop exit
PB: predicated region body
PF: predicated region fallthrough
CT: control target
= control target key end

     0   :  { %s554_s15 = smov 0   ;;  %s556_s16 = smov 0   ;;  %s604_s0 = inlined_call_operand.vmem [shape: f32[2,4,512], index: 0, kind: input, shape index: {}]   ;;  %s605_s1 = inlined_call_operand.vmem [shape: f32[8,4], index: 1, kind: input, shape index: {}]   ;;  %s606_s2 = inlined_call_operand.vmem [shape: f32[8,1], index: 2, kind: input, shape index: {}]   ;;  %s607_s3 = inlined_call_operand.vmem [shape: f32[8,1], index: 3, kind: input, shape index: {}]   ;;  %s608_s4 = inlined_call_operand.vmem [shape: f32[2,8,512], index: 4, kind: output, shape index: {}]  }
   0x1   :  { %s558_s17 = smov 0  }
   0x2 LB: > { %s26_s18 = sadd.s32 1, %s519_s16  ;;  %p458_p0 = scmp.ge.s32.totalorder %s523_s17, 1  ;;  %s523_s17 = sphi %s558_s17, %s14_s17   ;;  %s519_s16 = sphi %s556_s16, %s610_s16   ;;  %s515_s15 = sphi %s554_s15, %s609_s15  }
   0x3   : > { %p28_p1 = scmp.ge.s32.totalorder %s26_s18, 2  ;;  %p183_p2 = scmp.lt.s32.totalorder %s523_s17, 3 }
   0x5   : > { %s612_s18 = smov (%p28_p1, %s26_s18), 0  ;;  %p184_p3 = pnand %p458_p0, %p183_p2 }
   0x6   : > { %p218_p4 = scmp.lt.s32.totalorder (!%p184_p3), %s515_s15, 1 }
   0x7   : > { %187 = sbr.rel (%p184_p3) target bundleno = 158 (0x9e), region = 36 }
   0xc   : > { %v239_v0 = vld [vmem:[%s605_s1] sm:$0xff]  ;;  %v525_v1 = vmov 0   ;;  %v526_v2 = vmov 2   ;;  %v527_v5 = vmov 1   ;;  %v528_v6 = vmov 3   ;;  %s614_s15 = smov (!%p218_p4, %s515_s15), 1 }
   0xd   : > { %495 = vset.pattern.permute.xlu0 %v525_v1  ;;  %497 = vset.pattern.permute.xlu1 %v526_v2  ;;  %v335_v3 = vld [vmem:[%s606_s2] sm:$0xff]  ;;  %s465_s25 = sshll.u32 %s614_s15, 4  ;;  %s466_s29 = sshll.u32 %s614_s15, 5 }
   0xe   : > { %242 = vperm.xlu0 %495, %v239_v0   ;;  %288 = vperm.xlu1 %497, %v239_v0   ;;  %v345_v4 = vld [vmem:[%s607_s3] sm:$0xff]  ;;  %s225_s28 = scalar_lea.vmem %s604_s0, %s465_s25  ;;  %s235_s6 = scalar_lea.vmem %s608_s4, %s466_s29 }
   0xf   : > { %499 = vset.pattern.permute.xlu2 %v525_v1  ;;  %v237_v7 = vld [vmem:[%s225_s28] sm:$0xff]  ;;  %v238_v8 = vld [vmem:[%s225_s28 + $0x8] sm:$0xff] }
  0x10   : > { %338 = vperm.xlu2 %499, %v335_v3   ;;  %v247_v10 = vperm.slane %v237_v7, 0  ;;  %v248_v11 = vperm.slane %v237_v7, 4  ;;  %v249_v12 = vperm.slane %v238_v8, 0  ;;  %v250_v13 = vperm.slane %v238_v8, 4 }
  0x11   : > { %v291_v15 = vperm.slane %v237_v7, 2  ;;  %v292_v16 = vperm.slane %v237_v7, 6  ;;  %v293_v17 = vperm.slane %v238_v8, 2  ;;  %v294_v18 = vperm.slane %v238_v8, 6 }
  0x12   : > { %v267_v19 = vperm.slane %v237_v7, 1  ;;  %v268_v20 = vperm.slane %v237_v7, 5  ;;  %v269_v21 = vperm.slane %v238_v8, 1  ;;  %v270_v22 = vperm.slane %v238_v8, 5 }
  0x13   : > { %v315_v23 = vperm.slane %v237_v7, 3  ;;  %v316_v24 = vperm.slane %v237_v7, 7  ;;  %v317_v25 = vperm.slane %v238_v8, 3  ;;  %v318_v26 = vperm.slane %v238_v8, 7 }
  0x14   : > { %v255_v27 = vperm.slane %v247_v10, 0  ;;  %v256_v28 = vperm.slane %v248_v11, 0  ;;  %v257_v29 = vperm.slane %v249_v12, 0  ;;  %v258_v30 = vperm.slane %v250_v13, 0 }
  0x15   : > { %v299_v31 = vperm.slane %v291_v15, 2  ;;  %v300_v32 = vperm.slane %v292_v16, 2  ;;  %v301_v33 = vperm.slane %v293_v17, 2  ;;  %v302_v34 = vperm.slane %v294_v18, 2 }
  0x16   : > { %496 = vset.pattern.permute.xlu0 %v527_v5  ;;  %498 = vset.pattern.permute.xlu1 %v528_v6  ;;  %v275_v35 = vperm.slane %v267_v19, 1  ;;  %v276_v36 = vperm.slane %v268_v20, 1  ;;  %v277_v37 = vperm.slane %v269_v21, 1  ;;  %v278_v38 = vperm.slane %v270_v22, 1 }
  0x17   : > { %264 = vperm.xlu0 %496, %v239_v0   ;;  %312 = vperm.xlu1 %498, %v239_v0   ;;  %v323_v39 = vperm.slane %v315_v23, 3  ;;  %v324_v40 = vperm.slane %v316_v24, 3  ;;  %v325_v41 = vperm.slane %v317_v25, 3  ;;  %v326_v42 = vperm.slane %v318_v26, 3 }
  0x18   : > { %348 = vperm.xlu2 %499, %v345_v4  }
  0x1f   : > { %500 = vset.pattern.permute.xlu0 %v525_v1 }
  0x6a   : > { %v339_v47 = vpop.permute.xlu2 %338 }
  0x80   : > { %v243_v9 = vpop.permute.xlu0 %242  ;;  %v289_v14 = vpop.permute.xlu1 %288 }
  0x81   : > { %v259_v43 = vmul.f32 %v255_v27, %v243_v9  ;;  %v260_v44 = vmul.f32 %v256_v28, %v243_v9  ;;  %v261_v45 = vmul.f32 %v257_v29, %v243_v9  ;;  %v262_v46 = vmul.f32 %v258_v30, %v243_v9 }
  0x82   : > { %v303_v48 = vmul.f32 %v299_v31, %v289_v14  ;;  %v304_v49 = vmul.f32 %v300_v32, %v289_v14  ;;  %v305_v50 = vmul.f32 %v301_v33, %v289_v14  ;;  %v306_v51 = vmul.f32 %v302_v34, %v289_v14  ;;  %v349_v14 = vpop.permute.xlu2 %348 }
  0x89   : > { %v265_v52 = vpop.permute.xlu0 %264  ;;  %v313_v53 = vpop.permute.xlu1 %312 }
  0x8a   : > { %v279_v54 = vmul.f32 %v275_v35, %v265_v52  ;;  %v280_v55 = vmul.f32 %v276_v36, %v265_v52  ;;  %v281_v56 = vmul.f32 %v277_v37, %v265_v52  ;;  %v282_v57 = vmul.f32 %v278_v38, %v265_v52 }
  0x8b   : > { %v327_v58 = vmul.f32 %v323_v39, %v313_v53  ;;  %v328_v59 = vmul.f32 %v324_v40, %v313_v53  ;;  %v329_v60 = vmul.f32 %v325_v41, %v313_v53  ;;  %v330_v61 = vmul.f32 %v326_v42, %v313_v53 }
  0x8c   : > { %v283_v62 = vadd.f32 %v279_v54, %v259_v43  ;;  %v284_v63 = vadd.f32 %v280_v55, %v260_v44  ;;  %v285_v0 = vadd.f32 %v281_v56, %v261_v45  ;;  %v286_v1 = vadd.f32 %v282_v57, %v262_v46 }
  0x8e   : > { %v307_v2 = vadd.f32 %v303_v48, %v283_v62  ;;  %v308_v3 = vadd.f32 %v304_v49, %v284_v63  ;;  %v309_v4 = vadd.f32 %v305_v50, %v285_v0  ;;  %v310_v5 = vadd.f32 %v306_v51, %v286_v1 }
  0x90   : > { %v331_v6 = vadd.f32 %v327_v58, %v307_v2  ;;  %v332_v7 = vadd.f32 %v328_v59, %v308_v3  ;;  %v333_v8 = vadd.f32 %v329_v60, %v309_v4  ;;  %v334_v9 = vadd.f32 %v330_v61, %v310_v5 }
  0x92   : > { %v341_v10 = vmul.f32 %v339_v47, %v331_v6  ;;  %v342_v11 = vmul.f32 %v339_v47, %v332_v7  ;;  %v343_v12 = vmul.f32 %v339_v47, %v333_v8  ;;  %v344_v13 = vmul.f32 %v339_v47, %v334_v9 }
  0x94   : > { %v351_v15 = vadd.f32 %v349_v14, %v341_v10  ;;  %v352_v16 = vadd.f32 %v349_v14, %v342_v11  ;;  %v353_v17 = vadd.f32 %v349_v14, %v343_v12  ;;  %v354_v18 = vadd.f32 %v349_v14, %v344_v13 }
  0x96   : > { %v355_v19 = vmax.f32 %v351_v15, 0.1  ;;  %v356_v20 = vmax.f32 %v352_v16, 0.1  ;;  %v357_v21 = vmax.f32 %v353_v17, 0.1 }
  0x97   : > { %v358_v22 = vmax.f32 %v354_v18, 0.1 }
  0x98   : > { %v359_v23 = vmin.f32 %v355_v19, 0.11  ;;  %v360_v24 = vmin.f32 %v356_v20, 0.11  ;;  %v361_v25 = vmin.f32 %v357_v21, 0.11 }
  0x99   : > { %v362_v26 = vmin.f32 %v358_v22, 0.11 }
  0x9a   : > { %363 = vst [vmem:[%s235_s6] sm:$0xff] %v359_v23 }
  0x9b   : > { %364 = vst [vmem:[%s235_s6 + $0x8] sm:$0xff] %v360_v24 }
  0x9c   : > { %365 = vst [vmem:[%s235_s6 + $0x10] sm:$0xff] %v361_v25 }
  0x9d   : > { %366 = vst [vmem:[%s235_s6 + $0x18] sm:$0xff] %v362_v26 }
  0x9e PF: > { %s14_s17 = sadd.s32 1, %s523_s17   ;;  %s609_s15 = smov %s519_s16 }
  0x9f   : > { %p11_p5 = scmp.ge.s32.totalorder %s14_s17, 4   ;;  %s610_s16 = smov %s612_s18 }
  0xa1   :  { %13 = sbr.rel (!%p11_p5) target bundleno = 2 (0x2), region = 66 }

// kernel: model_forward.2
= control target key start
LH: loop header
LB: loop body
LE: loop exit
PB: predicated region body
PF: predicated region fallthrough
CT: control target
= control target key end

     0   :  { %s524_s12 = smov 0   ;;  %s526_s13 = smov 0   ;;  %s567_s0 = inlined_call_operand.vmem [shape: f32[2,4,512], index: 0, kind: input, shape index: {}]   ;;  %s568_s1 = inlined_call_operand.vmem [shape: f32[8,4], index: 1, kind: input, shape index: {}]   ;;  %s569_s2 = inlined_call_operand.vmem [shape: f32[2,8,128], index: 2, kind: output, shape index: {0}]   ;;  %s570_s3 = inlined_call_operand.vmem [shape: f32[2,8,128], index: 3, kind: output, shape index: {1}]  }
   0x1   :  { %s528_s14 = smov 0  }
   0x2 LB: > { %s26_s15 = sadd.s32 1, %s494_s13  ;;  %p434_p0 = scmp.ge.s32.totalorder %s498_s14, 1  ;;  %s498_s14 = sphi %s528_s14, %s14_s14   ;;  %s494_s13 = sphi %s526_s13, %s572_s13   ;;  %s490_s12 = sphi %s524_s12, %s571_s12  }
   0x3   : > { %p28_p1 = scmp.ge.s32.totalorder %s26_s15, 2  ;;  %p159_p2 = scmp.lt.s32.totalorder %s498_s14, 3 }
   0x5   : > { %s574_s15 = smov (%p28_p1, %s26_s15), 0  ;;  %p160_p3 = pnand %p434_p0, %p159_p2 }
   0x6   : > { %p191_p4 = scmp.lt.s32.totalorder (!%p160_p3), %s490_s12, 1 }
   0x7   : > { %163 = sbr.rel (%p160_p3) target bundleno = 277 (0x115), region = 28 }
   0xc   : > { %v216_v0 = vld [vmem:[%s568_s1] sm:$0xff]  ;;  %v500_v1 = vmov 0   ;;  %v501_v2 = vmov 2   ;;  %v502_v3 = vmov 1   ;;  %v503_v4 = vmov 3   ;;  %s576_s12 = smov (!%p191_p4, %s490_s12), 1 }
   0xd   : > { %471 = vset.pattern.permute.xlu0 %v500_v1  ;;  %473 = vset.pattern.permute.xlu1 %v501_v2  ;;  %s441_s18 = sshll.u32 %s576_s12, 4  ;;  %s437_s22 = sshll.u32 %s576_s12, 3 }
   0xe   : > { %219 = vperm.xlu0 %471, %v216_v0   ;;  %265 = vperm.xlu1 %473, %v216_v0   ;;  %s198_s21 = scalar_lea.vmem %s567_s0, %s441_s18  ;;  %s203_s25 = scalar_lea.vmem %s569_s2, %s437_s22 }
   0xf   : > { %v214_v5 = vld [vmem:[%s198_s21] sm:$0xff]  ;;  %v215_v6 = vld [vmem:[%s198_s21 + $0x8] sm:$0xff]  ;;  %s207_s28 = scalar_lea.vmem %s570_s3, %s437_s22 }
  0x10   : > { %v224_v8 = vperm.slane %v214_v5, 0  ;;  %v225_v10 = vperm.slane %v214_v5, 4  ;;  %v226_v11 = vperm.slane %v215_v6, 0  ;;  %v227_v12 = vperm.slane %v215_v6, 4 }
  0x11   : > { %v268_v13 = vperm.slane %v214_v5, 2  ;;  %v244_v14 = vperm.slane %v214_v5, 1  ;;  %v245_v15 = vperm.slane %v214_v5, 5  ;;  %v246_v16 = vperm.slane %v215_v6, 1 }
  0x12   : > { %v247_v17 = vperm.slane %v215_v6, 5  ;;  %v269_v18 = vperm.slane %v214_v5, 6  ;;  %v270_v19 = vperm.slane %v215_v6, 2  ;;  %v292_v20 = vperm.slane %v214_v5, 3 }
  0x13   : > { %v293_v21 = vperm.slane %v214_v5, 7  ;;  %v232_v22 = vperm.slane %v224_v8, 0  ;;  %v271_v23 = vperm.slane %v215_v6, 6  ;;  %v294_v24 = vperm.slane %v215_v6, 3 }
  0x14   : > { %v295_v25 = vperm.slane %v215_v6, 7  ;;  %v233_v26 = vperm.slane %v225_v10, 0  ;;  %v234_v27 = vperm.slane %v226_v11, 0  ;;  %v235_v28 = vperm.slane %v227_v12, 0 }
  0x15   : > { %v276_v29 = vperm.slane %v268_v13, 2  ;;  %v252_v30 = vperm.slane %v244_v14, 1  ;;  %v253_v31 = vperm.slane %v245_v15, 1  ;;  %v254_v32 = vperm.slane %v246_v16, 1 }
  0x16   : > { %472 = vset.pattern.permute.xlu0 %v502_v3  ;;  %474 = vset.pattern.permute.xlu1 %v503_v4  ;;  %v255_v33 = vperm.slane %v247_v17, 1  ;;  %v277_v34 = vperm.slane %v269_v18, 2  ;;  %v278_v35 = vperm.slane %v270_v19, 2  ;;  %v300_v36 = vperm.slane %v292_v20, 3 }
  0x17   : > { %241 = vperm.xlu0 %472, %v216_v0   ;;  %289 = vperm.xlu1 %474, %v216_v0   ;;  %v301_v37 = vperm.slane %v293_v21, 3  ;;  %v279_v39 = vperm.slane %v271_v23, 2  ;;  %v302_v40 = vperm.slane %v294_v24, 3  ;;  %v303_v41 = vperm.slane %v295_v25, 3 }
  0x1f   : > { %475 = vset.pattern.permute.xlu0 %v503_v4 }
  0x80   : > { %v220_v7 = vpop.permute.xlu0 %219  ;;  %v266_v9 = vpop.permute.xlu1 %265 }
  0x81   : > { %v236_v38 = vmul.f32 %v232_v22, %v220_v7  ;;  %v237_v42 = vmul.f32 %v233_v26, %v220_v7  ;;  %v238_v43 = vmul.f32 %v234_v27, %v220_v7  ;;  %v239_v44 = vmul.f32 %v235_v28, %v220_v7 }
  0x82   : > { %v280_v45 = vmul.f32 %v276_v29, %v266_v9  ;;  %v281_v52 = vmul.f32 %v277_v34, %v266_v9  ;;  %v282_v53 = vmul.f32 %v278_v35, %v266_v9  ;;  %v283_v60 = vmul.f32 %v279_v39, %v266_v9 }
  0x89   : > { %v242_v46 = vpop.permute.xlu0 %241  ;;  %v290_v47 = vpop.permute.xlu1 %289 }
  0x8a   : > { %v256_v48 = vmul.f32 %v252_v30, %v242_v46  ;;  %v257_v49 = vmul.f32 %v253_v31, %v242_v46  ;;  %v258_v50 = vmul.f32 %v254_v32, %v242_v46  ;;  %v259_v51 = vmul.f32 %v255_v33, %v242_v46 }
  0x8b   : > { %v304_v54 = vmul.f32 %v300_v36, %v290_v47  ;;  %v305_v55 = vmul.f32 %v301_v37, %v290_v47  ;;  %v306_v63 = vmul.f32 %v302_v40, %v290_v47  ;;  %v307_v1 = vmul.f32 %v303_v41, %v290_v47 }
  0x8c   : > { %v260_v56 = vadd.f32 %v256_v48, %v236_v38  ;;  %v261_v57 = vadd.f32 %v257_v49, %v237_v42  ;;  %v262_v58 = vadd.f32 %v258_v50, %v238_v43  ;;  %v263_v59 = vadd.f32 %v259_v51, %v239_v44 }
  0x8e   : > { %v284_v61 = vadd.f32 %v280_v45, %v260_v56  ;;  %v285_v62 = vadd.f32 %v281_v52, %v261_v57  ;;  %v286_v0 = vadd.f32 %v282_v53, %v262_v58  ;;  %v287_v4 = vadd.f32 %v283_v60, %v263_v59 }
  0x90   : > { %v308_v2 = vadd.f32 %v304_v54, %v284_v61  ;;  %v309_v3 = vadd.f32 %v305_v55, %v285_v62  ;;  %v310_v5 = vadd.f32 %v306_v63, %v286_v0  ;;  %v311_v10 = vadd.f32 %v307_v1, %v287_v4 }
  0x92   : > { %v312_v6 = vadd.f32 %v309_v3, %v308_v2  ;;  %v317_v7 = vmul.f32 %v308_v2, %v308_v2  ;;  %v318_v8 = vmul.f32 %v309_v3, %v309_v3  ;;  %v319_v14 = vmul.f32 %v310_v5, %v310_v5 }
  0x93   : > { %v320_v15 = vmul.f32 %v311_v10, %v311_v10 }
  0x94   : > { %v313_v11 = vadd.f32 %v312_v6, %v310_v5  ;;  %v321_v13 = vadd.f32 %v318_v8, %v317_v7 }
  0x96   : > { %v314_v12 = vadd.f32 %v313_v11, %v311_v10  ;;  %v322_v9 = vadd.f32 %v321_v13, %v319_v14 }
  0x98   : > { %315 = vadd.xlane.f32.xlu2 %v314_v12  ;;  %v323_v16 = vadd.f32 %v322_v9, %v320_v15 }
  0xa0   : > { %324 = vadd.xlane.f32.xlu2 %v323_v16 }
 0x10b   : > { %v316_v17 = vpop.xlane.xlu2 %315 }
 0x10c   : > { %328 = vst [vmem:[%s203_s25] sm:$0xff] %v316_v17 }
 0x113   : > { %v325_v18 = vpop.xlane.xlu2 %324 }
 0x114   : > { %331 = vst [vmem:[%s207_s28] sm:$0xff] %v325_v18 }
 0x115 PF: > { %s14_s14 = sadd.s32 1, %s498_s14   ;;  %s571_s12 = smov %s494_s13 }
 0x116   : > { %p11_p5 = scmp.ge.s32.totalorder %s14_s14, 4   ;;  %s572_s13 = smov %s574_s15 }
 0x118   :  { %13 = sbr.rel (!%p11_p5) target bundleno = 2 (0x2), region = 74 }

</bundles_post_ra>
